<compile_context>
chip_gen: v6e
topology: v6e:2x2x1
jax: 0.10.0
libtpu: 0.0.40
codegen_flags: <defaults>
</compile_context>

<pallas_src>
import functools

import jax
import jax.numpy as jnp
from jax.experimental import pallas as pl
from jax.experimental.pallas import tpu as pltpu

LANE = 128
SUBLANE = 8


def _round_up(x, m):
    return ((x + m - 1) // m) * m


def _mlp_mean_kernel(n_layers, obs_ref, *refs):
    # refs layout: (w_0, b_0), ..., (w_{n_layers-1}, b_{n_layers-1}), (w_out, b_out), mean_ref
    param_refs = refs[: 2 * (n_layers + 1)]
    mean_ref = refs[2 * (n_layers + 1)]

    x = obs_ref[...]  # bf16 (tile_b, ob_pad)
    # hidden layers: Linear -> tanh (matches ptu.build_mlp default activation)
    for l in range(n_layers):
        w = param_refs[2 * l][...]        # bf16 (in_pad, out_pad)
        b = param_refs[2 * l + 1][...]    # f32  (1, out_pad)
        h = jnp.dot(x, w, preferred_element_type=jnp.float32) + b
        # tanh/bias in f32 (free VPU/EUP filler while MXU is busy); cast for next MXU op.
        x = jnp.tanh(h).astype(jnp.bfloat16)
    # output layer: Linear -> identity
    w_out = param_refs[2 * n_layers][...]
    b_out = param_refs[2 * n_layers + 1][...]
    mean_ref[...] = jnp.dot(x, w_out, preferred_element_type=jnp.float32) + b_out


def mlp_policy_forward(obs, params, logstd, *, n_layers, tile_b=None):
    """Returns (means, std) of the Normal action distribution (means from the Pallas kernel)."""
    B, ob_dim = obs.shape
    ac_dim = params[-1][0].shape[-1]

    # ---- pad feature dims to the 128-lane width (zero padding keeps the math exact:
    #      padded weight rows/cols are 0, so padded lanes never contribute) ----
    padded_params = []
    in_dim, in_pad = ob_dim, _round_up(ob_dim, LANE)
    ob_pad = in_pad
    for (w, b) in params:
        out_dim = w.shape[-1]
        out_pad = _round_up(out_dim, LANE)
        w_p = jnp.zeros((in_pad, out_pad), jnp.bfloat16)
        w_p = w_p.at[:in_dim, :out_dim].set(w.astype(jnp.bfloat16))
        b_p = jnp.zeros((1, out_pad), jnp.float32)
        b_p = b_p.at[:, :out_dim].set(b.reshape(1, -1).astype(jnp.float32))
        padded_params.append((w_p, b_p))
        in_dim, in_pad = out_dim, out_pad
    ac_pad = in_pad

    # ---- batch tiling: one big tile when B is small, otherwise 256-row tiles ----
    if tile_b is None:
        tile_b = min(_round_up(B, SUBLANE), 256)
    tile_b = _round_up(tile_b, SUBLANE)
    b_pad = _round_up(B, tile_b)

    obs_p = jnp.zeros((b_pad, ob_pad), jnp.bfloat16)
    obs_p = obs_p.at[:B, :ob_dim].set(obs.astype(jnp.bfloat16))

    kernel = functools.partial(_mlp_mean_kernel, n_layers)

    flat_params = []
    in_specs = [pl.BlockSpec((tile_b, ob_pad), lambda i: (i, 0))]
    for (w_p, b_p) in padded_params:
        flat_params.extend([w_p, b_p])
        in_specs.append(pl.BlockSpec(w_p.shape, lambda i: (0, 0)))
        in_specs.append(pl.BlockSpec(b_p.shape, lambda i: (0, 0)))

    means_p = pl.pallas_call(
        kernel,
        grid_spec=pltpu.PrefetchScalarGridSpec(
            num_scalar_prefetch=0,
            grid=(b_pad // tile_b,),
            in_specs=in_specs,
            out_specs=pl.BlockSpec((tile_b, ac_pad), lambda i: (i, 0)),
        ),
        out_shape=jax.ShapeDtypeStruct((b_pad, ac_pad), jnp.float32),
        compiler_params=pltpu.CompilerParams(
            dimension_semantics=("parallel",),
        ),
    )(obs_p, *flat_params)

    means = means_p[:B, :ac_dim]
    # std = exp(logstd) is batch-constant -> compute once outside the kernel and broadcast.
    std = jnp.broadcast_to(jnp.exp(logstd.reshape(1, -1)), means.shape)
    return means, std


def init_mlp_params(key, ob_dim, ac_dim, n_layers, size):
    """Deterministic init matching mean_net's shapes (PyTorch Linear default-style bounds)."""
    params = []
    in_dim = ob_dim
    dims = [size] * n_layers + [ac_dim]
    for out_dim in dims:
        key, kw, kb = jax.random.split(key, 3)
        bound = 1.0 / jnp.sqrt(in_dim)
        w = jax.random.uniform(kw, (in_dim, out_dim), jnp.float32, -bound, bound)
        b = jax.random.uniform(kb, (1, out_dim), jnp.float32, -bound, bound)
        params.append((w, b))
        in_dim = out_dim
    return params


def reference_forward(obs, params, logstd, n_layers):
    x = obs
    for (w, b) in params[:n_layers]:
        x = jnp.tanh(x @ w + b.reshape(1, -1))
    w, b = params[-1]
    means = x @ w + b.reshape(1, -1)
    std = jnp.broadcast_to(jnp.exp(logstd.reshape(1, -1)), means.shape)
    return means, std


if __name__ == "__main__":
    # Small, MLP-consistent shapes.
    B, ob_dim, ac_dim, n_layers, size = 16, 16, 8, 2, 32

    key = jax.random.PRNGKey(0)
    key, k_obs = jax.random.split(key)
    obs = jax.random.normal(k_obs, (B, ob_dim), dtype=jnp.float32)

    params = init_mlp_params(key, ob_dim, ac_dim, n_layers, size)
    # nn.Parameter(torch.zeros(ac_dim)) -> logstd = 0.
    logstd = jnp.zeros((ac_dim,), dtype=jnp.float32)

    means, std = mlp_policy_forward(obs, params, logstd, n_layers=n_layers)
    means = jax.block_until_ready(means)
    std = jax.block_until_ready(std)

    ref_means, ref_std = reference_forward(obs, params, logstd, n_layers)
    # bf16 matmul operands with f32 accumulation -> looser tolerance than pure-f32.
    assert jnp.allclose(means, ref_means, atol=3e-2, rtol=3e-2), (
        float(jnp.max(jnp.abs(means - ref_means))))
    assert jnp.allclose(std, ref_std, atol=1e-6, rtol=1e-6)

    # TODO(synk): distributions.Normal sampling (get_action) is host-side RNG glue,
    # not part of the forward hot path, so it is left outside the kernel.
    print("KERNEL_OK")
</pallas_src>

<mosaic_0001>
module attributes {stable_mosaic.version = 11 : i64} {
  func.func @_mlp_mean_kernel(%arg0: i32, %arg1: memref<16x128xbf16, #tpu.memory_space<vmem>>, %arg2: memref<128x128xbf16, #tpu.memory_space<vmem>>, %arg3: memref<1x128xf32, #tpu.memory_space<vmem>>, %arg4: memref<128x128xbf16, #tpu.memory_space<vmem>>, %arg5: memref<1x128xf32, #tpu.memory_space<vmem>>, %arg6: memref<128x128xbf16, #tpu.memory_space<vmem>>, %arg7: memref<1x128xf32, #tpu.memory_space<vmem>>, %arg8: memref<16x128xf32, #tpu.memory_space<vmem>>) attributes {dimension_semantics = [#tpu.dimension_semantics<parallel>], iteration_bounds = array<i64: 1>, scalar_prefetch = 0 : i64, scratch_operands = 0 : i64, tpu.core_type = #tpu.core_type<tc>, window_params = [{transform_indices = @transform_0, window_bounds = array<i64: 16, 128>}, {pipeline_mode = #tpu.pipeline_mode<synchronous>, transform_indices = @transform_1, window_bounds = array<i64: 128, 128>}, {pipeline_mode = #tpu.pipeline_mode<synchronous>, transform_indices = @transform_2, window_bounds = array<i64: 1, 128>}, {pipeline_mode = #tpu.pipeline_mode<synchronous>, transform_indices = @transform_3, window_bounds = array<i64: 128, 128>}, {pipeline_mode = #tpu.pipeline_mode<synchronous>, transform_indices = @transform_4, window_bounds = array<i64: 1, 128>}, {pipeline_mode = #tpu.pipeline_mode<synchronous>, transform_indices = @transform_5, window_bounds = array<i64: 128, 128>}, {pipeline_mode = #tpu.pipeline_mode<synchronous>, transform_indices = @transform_6, window_bounds = array<i64: 1, 128>}, {transform_indices = @transform_7, window_bounds = array<i64: 16, 128>}]} {
    %c0 = arith.constant 0 : index
    %c0_0 = arith.constant 0 : index
    %0 = vector.load %arg1[%c0, %c0_0] : memref<16x128xbf16, #tpu.memory_space<vmem>>, vector<16x128xbf16>
    %c0_1 = arith.constant 0 : index
    %c0_2 = arith.constant 0 : index
    %1 = vector.load %arg2[%c0_1, %c0_2] : memref<128x128xbf16, #tpu.memory_space<vmem>>, vector<128x128xbf16>
    %c0_3 = arith.constant 0 : index
    %c0_4 = arith.constant 0 : index
    %2 = vector.load %arg3[%c0_3, %c0_4] : memref<1x128xf32, #tpu.memory_space<vmem>>, vector<1x128xf32>
    %cst = arith.constant dense<0.000000e+00> : vector<16x128xf32>
    %3 = tpu.matmul %0, %1, %cst {dimension_numbers = #tpu.dot_dimension_numbers<[1], [0], [0], [1], [0, 0, 1, 1], [], []>} : vector<16x128xbf16>, vector<128x128xbf16>, vector<16x128xf32> -> vector<16x128xf32>
    %4 = vector.broadcast %2 : vector<1x128xf32> to vector<16x128xf32>
    %5 = arith.addf %3, %4 : vector<16x128xf32>
    %6 = math.tanh %5 : vector<16x128xf32>
    %7 = arith.truncf %6 : vector<16x128xf32> to vector<16x128xbf16>
    %c0_5 = arith.constant 0 : index
    %c0_6 = arith.constant 0 : index
    %8 = vector.load %arg4[%c0_5, %c0_6] : memref<128x128xbf16, #tpu.memory_space<vmem>>, vector<128x128xbf16>
    %c0_7 = arith.constant 0 : index
    %c0_8 = arith.constant 0 : index
    %9 = vector.load %arg5[%c0_7, %c0_8] : memref<1x128xf32, #tpu.memory_space<vmem>>, vector<1x128xf32>
    %cst_9 = arith.constant dense<0.000000e+00> : vector<16x128xf32>
    %10 = tpu.matmul %7, %8, %cst_9 {dimension_numbers = #tpu.dot_dimension_numbers<[1], [0], [0], [1], [0, 0, 1, 1], [], []>} : vector<16x128xbf16>, vector<128x128xbf16>, vector<16x128xf32> -> vector<16x128xf32>
    %11 = vector.broadcast %9 : vector<1x128xf32> to vector<16x128xf32>
    %12 = arith.addf %10, %11 : vector<16x128xf32>
    %13 = math.tanh %12 : vector<16x128xf32>
    %14 = arith.truncf %13 : vector<16x128xf32> to vector<16x128xbf16>
    %c0_10 = arith.constant 0 : index
    %c0_11 = arith.constant 0 : index
    %15 = vector.load %arg6[%c0_10, %c0_11] : memref<128x128xbf16, #tpu.memory_space<vmem>>, vector<128x128xbf16>
    %c0_12 = arith.constant 0 : index
    %c0_13 = arith.constant 0 : index
    %16 = vector.load %arg7[%c0_12, %c0_13] : memref<1x128xf32, #tpu.memory_space<vmem>>, vector<1x128xf32>
    %cst_14 = arith.constant dense<0.000000e+00> : vector<16x128xf32>
    %17 = tpu.matmul %14, %15, %cst_14 {dimension_numbers = #tpu.dot_dimension_numbers<[1], [0], [0], [1], [0, 0, 1, 1], [], []>} : vector<16x128xbf16>, vector<128x128xbf16>, vector<16x128xf32> -> vector<16x128xf32>
    %18 = vector.broadcast %16 : vector<1x128xf32> to vector<16x128xf32>
    %19 = arith.addf %17, %18 : vector<16x128xf32>
    %c0_15 = arith.constant 0 : index
    %c0_16 = arith.constant 0 : index
    %20 = vector.load %arg8[%c0_15, %c0_16] : memref<16x128xf32, #tpu.memory_space<vmem>>, vector<16x128xf32>
    tpu.vector_store %arg8[%c0_15, %c0_16], %19 {strides = array<i32>} : memref<16x128xf32, #tpu.memory_space<vmem>>, vector<16x128xf32>,
    return
  }
  func.func @transform_0(%arg0: i32) -> (i32, i32) {
    %c0_i32 = arith.constant 0 : i32
    %c0_i32_0 = arith.constant 0 : i32
    return %arg0, %c0_i32 : i32, i32
  }
  func.func @transform_1(%arg0: i32) -> (i32, i32) {
    %c0_i32 = arith.constant 0 : i32
    %c0_i32_0 = arith.constant 0 : i32
    %c0_i32_1 = arith.constant 0 : i32
    return %c0_i32, %c0_i32_0 : i32, i32
  }
  func.func @transform_2(%arg0: i32) -> (i32, i32) {
    %c0_i32 = arith.constant 0 : i32
    %c0_i32_0 = arith.constant 0 : i32
    %c0_i32_1 = arith.constant 0 : i32
    return %c0_i32, %c0_i32_0 : i32, i32
  }
  func.func @transform_3(%arg0: i32) -> (i32, i32) {
    %c0_i32 = arith.constant 0 : i32
    %c0_i32_0 = arith.constant 0 : i32
    %c0_i32_1 = arith.constant 0 : i32
    return %c0_i32, %c0_i32_0 : i32, i32
  }
  func.func @transform_4(%arg0: i32) -> (i32, i32) {
    %c0_i32 = arith.constant 0 : i32
    %c0_i32_0 = arith.constant 0 : i32
    %c0_i32_1 = arith.constant 0 : i32
    return %c0_i32, %c0_i32_0 : i32, i32
  }
  func.func @transform_5(%arg0: i32) -> (i32, i32) {
    %c0_i32 = arith.constant 0 : i32
    %c0_i32_0 = arith.constant 0 : i32
    %c0_i32_1 = arith.constant 0 : i32
    return %c0_i32, %c0_i32_0 : i32, i32
  }
  func.func @transform_6(%arg0: i32) -> (i32, i32) {
    %c0_i32 = arith.constant 0 : i32
    %c0_i32_0 = arith.constant 0 : i32
    %c0_i32_1 = arith.constant 0 : i32
    return %c0_i32, %c0_i32_0 : i32, i32
  }
  func.func @transform_7(%arg0: i32) -> (i32, i32) {
    %c0_i32 = arith.constant 0 : i32
    %c0_i32_0 = arith.constant 0 : i32
    return %arg0, %c0_i32 : i32, i32
  }
}

</mosaic_0001>

<bundles_post_ra>
// kernel: tpu_custom_call.1
= control target key start
LH: loop header
LB: loop body
LE: loop exit
PB: predicated region body
PF: predicated region fallthrough
CT: control target
= control target key end

     0   :  { %12 = vsyncpa [#allocation3], 0  ;;  %s838_s0 = inlined_call_operand.hbm [shape: bf16[16,128], index: 0, kind: input, shape index: {}]   ;;  %s839_s1 = inlined_call_operand.hbm [shape: bf16[128,128], index: 1, kind: input, shape index: {}]   ;;  %s840_s2 = inlined_call_operand.vmem [shape: f32[1,128], index: 2, kind: input, shape index: {}]   ;;  %s841_s3 = inlined_call_operand.hbm [shape: bf16[128,128], index: 3, kind: input, shape index: {}]   ;;  %s842_s4 = inlined_call_operand.vmem [shape: f32[1,128], index: 4, kind: input, shape index: {}]   ;;  %s843_s5 = inlined_call_operand.hbm [shape: bf16[128,128], index: 5, kind: input, shape index: {}]   ;;  %s844_s6 = inlined_call_operand.vmem [shape: f32[1,128], index: 6, kind: input, shape index: {}]   ;;  %s845_s7 = inlined_call_operand.hbm [shape: f32[16,128], index: 7, kind: output, shape index: {}]  }
   0x1   :  { %13 = vsyncpa [#allocation6], 0 }
   0x2   :  { %14 = vsyncpa [#allocation9], 0 }
   0x3   :  { %15 = vsyncpa [#allocation4], 0  ;;  %s721_s24 = smov [#allocation5]   ;;  %s722_s26 = smov [#allocation2]  }
   0x4   :  { %s33_s25 = sshll.u32 %s721_s24, 4  ;;  %s21_s27 = sshll.u32 %s722_s26, 4  ;;  %s34_s25 = int_to_ptr.vmem [resolvable:$true] %s33_s25  ;;  %s22_s27 = int_to_ptr.vmem [resolvable:$true] %s21_s27 }
   0x5   :  { %s621_s28 = scalar_lea.vmem %s34_s25, 1024  ;;  %p626_p1 = scmp.lt.s32.totalorder %s34_s25, %s34_s25 }
   0x6   :  { %p622_p0 = scmp.ne.s32.totalorder %s34_s25, %s621_s28  ;;  %p627_p2 = scmp.lt.s32.totalorder %s621_s28, %s621_s28 }
   0x8   :  { %p628_p3 = por %p627_p2, %p626_p1 }
   0xa   :  { %p629_p4 = pnand %p628_p3, %p622_p0 }
   0xc   :  { %632 = shalt.err (!%p629_p4)
}
   0xd   :  { %s723_s29 = smov 64   ;;  %s724_s30 = smov 4  }
   0xe   :  { %39 = dma.hbm_to_vmem [thread:$0]  %s839_s1, 1024, %s34_s25, [#allocation6], %s723_s29, %s723_s29, %s724_s30  }
   0xf   :  { %s641_s10 = scalar_lea.vmem %s22_s27, 128  ;;  %p646_p6 = scmp.lt.s32.totalorder %s22_s27, %s22_s27 }
  0x10   :  { %p642_p5 = scmp.ne.s32.totalorder %s22_s27, %s641_s10  ;;  %p647_p7 = scmp.lt.s32.totalorder %s641_s10, %s641_s10 }
  0x12   :  { %p648_p8 = por %p647_p7, %p646_p6 }
  0x14   :  { %p649_p9 = pnand %p648_p8, %p642_p5 }
  0x16   :  { %652 = shalt.err (!%p649_p9)
}
  0x17   :  { %27 = dma.hbm_to_vmem [thread:$0]  %s838_s0, 128, %s22_s27, [#allocation3], %s723_s29, %s723_s29, %s724_s30  }
  0x18   :  { %s725_s13 = smov [#allocation7]   ;;  %s726_s15 = smov [#allocation8]  }
  0x19   :  { %s47_s14 = sshll.u32 %s725_s13, 4  ;;  %s61_s16 = sshll.u32 %s726_s15, 4  ;;  %s48_s14 = int_to_ptr.vmem [resolvable:$true] %s47_s14  ;;  %s62_s16 = int_to_ptr.vmem [resolvable:$true] %s61_s16 }
  0x1a   :  { %s661_s1 = scalar_lea.vmem %s48_s14, 1024  ;;  %p666_p11 = scmp.lt.s32.totalorder %s48_s14, %s48_s14 }
  0x1b   :  { %p662_p10 = scmp.ne.s32.totalorder %s48_s14, %s661_s1  ;;  %p667_p12 = scmp.lt.s32.totalorder %s661_s1, %s661_s1 }
  0x1d   :  { %p668_p13 = por %p667_p12, %p666_p11 }
  0x1f   :  { %p669_p0 = pnand %p668_p13, %p662_p10 }
  0x21   :  { %672 = shalt.err (!%p669_p0)
}
  0x22   :  { %53 = dma.hbm_to_vmem [thread:$0]  %s841_s3, 1024, %s48_s14, [#allocation6], %s723_s29, %s723_s29, %s724_s30  }
  0x23   :  { %s681_s0 = scalar_lea.vmem %s62_s16, 1024  ;;  %p686_p2 = scmp.lt.s32.totalorder %s62_s16, %s62_s16 }
  0x24   :  { %p682_p1 = scmp.ne.s32.totalorder %s62_s16, %s681_s0  ;;  %p687_p3 = scmp.lt.s32.totalorder %s681_s0, %s681_s0 }
  0x26   :  { %p688_p4 = por %p687_p3, %p686_p2 }
  0x28   :  { %p689_p5 = pnand %p688_p4, %p682_p1 }
  0x2a   :  { %692 = shalt.err (!%p689_p5)
}
  0x2b   :  { %67 = dma.hbm_to_vmem [thread:$0]  %s843_s5, 1024, %s62_s16, [#allocation9], %s723_s29, %s723_s29, %s724_s30  }
  0x2c   :  { %713 = dma.done.wait [#allocation3], 128  }
  0x2d   :  { %714 = vsyncadd [#allocation3], 4294967168 }
  0x2e   :  { %715 = dma.done.wait [#allocation6], 2048  }
  0x2f   :  { %716 = vsyncadd [#allocation6], 4294965248 }
  0x30   :  { %717 = dma.done.wait [#allocation9], 1024  }
  0x31   :  { %718 = vsyncadd [#allocation9], 4294966272  ;;  %v727_v0 = vmov 0.0   ;;  %vm728_vm0 = vmmov 0   ;;  %v580_v1 = vld [vmem:[#allocation5 + $0x38] sm:$0xff]   ;;  %v581_v2 = vld [vmem:[#allocation5 + $0x30] sm:$0xff]  }
  0x32   :  { %509 = vmatprep.subr.bf16.mxu0 %v727_v0  ;;  %525 = vmatprep.mubr.msk.bf16.mxu0 %vm728_vm0, %v727_v0  ;;  %v582_v3 = vld [vmem:[#allocation5 + $0x28] sm:$0xff]   ;;  %v589_v4 = vld [vmem:[#allocation7 + $0x38] sm:$0xff]   ;;  %v583_v5 = vld [vmem:[#allocation5 + $0x20] sm:$0xff]   ;;  %s729_s24 = smov [#allocation10]  }
  0x33   :  { %529 = vmatprep.subr.bf16.mxu1 %v727_v0  ;;  %545 = vmatprep.mubr.msk.bf16.mxu1 %vm728_vm0, %v727_v0  ;;  %v590_v6 = vld [vmem:[#allocation7 + $0x30] sm:$0xff]   ;;  %v584_v7 = vld [vmem:[#allocation5 + $0x18] sm:$0xff]   ;;  %v586_v9 = vld [vmem:[#allocation5 + $0x8] sm:$0xff]  }
  0x34   :  { %510 = vmatpush3.bf16.msra.mxu0 %v580_v1  ;;  %530 = vmatpush3.bf16.msra.mxu1 %v589_v4  ;;  %v585_v8 = vld [vmem:[#allocation5 + $0x10] sm:$0xff]   ;;  %v587_v10 = vld [vmem:[#allocation5] sm:$0xff]   ;;  %v588_v11 = vld [vmem:[#allocation2] sm:$0xff]  }
  0x35   :  { %511 = vmatprep.subr.bf16.mxu0 %v727_v0  ;;  %531 = vmatprep.subr.bf16.mxu1 %v727_v0  ;;  %v591_v12 = vld [vmem:[#allocation7 + $0x28] sm:$0xff]   ;;  %v592_v13 = vld [vmem:[#allocation7 + $0x20] sm:$0xff]   ;;  %v593_v14 = vld [vmem:[#allocation7 + $0x18] sm:$0xff]  }
  0x36   :  { %v594_v15 = vld [vmem:[#allocation7 + $0x10] sm:$0xff]   ;;  %v595_v16 = vld [vmem:[#allocation7 + $0x8] sm:$0xff]   ;;  %v596_v17 = vld [vmem:[#allocation7] sm:$0xff]  }
  0x37   :  { %v597_v18 = vld [vmem:[#allocation8 + $0x38] sm:$0xff]   ;;  %v598_v19 = vld [vmem:[#allocation8 + $0x30] sm:$0xff]   ;;  %v599_v30 = vld [vmem:[#allocation8 + $0x28] sm:$0xff]  }
  0x38   :  { %512 = vmatpush3.bf16.msra.mxu0 %v581_v2  ;;  %532 = vmatpush3.bf16.msra.mxu1 %v590_v6  ;;  %v454_v20 = vld [vmem:[%s840_s2] ss:$0 sm:$0xff]  ;;  %v600_v31 = vld [vmem:[#allocation8 + $0x20] sm:$0xff]   ;;  %v602_v33 = vld [vmem:[#allocation8 + $0x10] sm:$0xff]  }
  0x39   :  { %513 = vmatprep.subr.bf16.mxu0 %v727_v0  ;;  %533 = vmatprep.subr.bf16.mxu1 %v727_v0  ;;  %v601_v32 = vld [vmem:[#allocation8 + $0x18] sm:$0xff]   ;;  %v603_v34 = vld [vmem:[#allocation8 + $0x8] sm:$0xff]   ;;  %v604_v35 = vld [vmem:[#allocation8] sm:$0xff]  }
  0x3a   :  { %v464_v36 = vld [vmem:[%s842_s4] ss:$0 sm:$0xff]  ;;  %s440_s4 = sshll.u32 %s729_s24, 4  ;;  %s441_s4 = int_to_ptr.vmem [resolvable:$true] %s440_s4 }
  0x3b   :  { %v473_v46 = vld [vmem:[%s844_s6] ss:$0 sm:$0xff]  ;;  %s693_s25 = scalar_lea.vmem %s441_s4, 256  ;;  %p698_p7 = scmp.lt.s32.totalorder %s441_s4, %s441_s4 }
  0x3c   :  { %514 = vmatpush3.bf16.msra.mxu0 %v582_v3  ;;  %534 = vmatpush3.bf16.msra.mxu1 %v591_v12  ;;  %p694_p6 = scmp.ne.s32.totalorder %s441_s4, %s693_s25  ;;  %p699_p8 = scmp.lt.s32.totalorder %s693_s25, %s693_s25 }
  0x3d   :  { %515 = vmatprep.subr.bf16.mxu0 %v727_v0  ;;  %535 = vmatprep.subr.bf16.mxu1 %v727_v0 }
  0x3e   :  { %p700_p9 = por %p699_p8, %p698_p7 }
  0x40   :  { %516 = vmatpush3.bf16.msra.mxu0 %v583_v5  ;;  %536 = vmatpush3.bf16.msra.mxu1 %v592_v13  ;;  %p701_p10 = pnand %p700_p9, %p694_p6 }
  0x41   :  { %517 = vmatprep.subr.bf16.mxu0 %v727_v0  ;;  %537 = vmatprep.subr.bf16.mxu1 %v727_v0 }
  0x44   :  { %518 = vmatpush3.bf16.msra.mxu0 %v584_v7  ;;  %538 = vmatpush3.bf16.msra.mxu1 %v593_v14 }
  0x45   :  { %519 = vmatprep.subr.bf16.mxu0 %v727_v0  ;;  %539 = vmatprep.subr.bf16.mxu1 %v727_v0 }
  0x48   :  { %520 = vmatpush3.bf16.msra.mxu0 %v585_v8  ;;  %540 = vmatpush3.bf16.msra.mxu1 %v594_v15 }
  0x49   :  { %521 = vmatprep.subr.bf16.mxu0 %v727_v0  ;;  %541 = vmatprep.subr.bf16.mxu1 %v727_v0 }
  0x4c   :  { %522 = vmatpush3.bf16.msra.mxu0 %v586_v9  ;;  %542 = vmatpush3.bf16.msra.mxu1 %v595_v16 }
  0x4d   :  { %523 = vmatprep.subr.bf16.mxu0 %v727_v0  ;;  %543 = vmatprep.subr.bf16.mxu1 %v727_v0 }
  0x50   :  { %524 = vmatpush3.bf16.msra.mxu0 %v587_v10  ;;  %544 = vmatpush3.bf16.msra.mxu1 %v596_v17 }
  0x51   :  { %549 = vmatprep.subr.bf16.mxu0 %v727_v0 }
  0x53   :  { %526 = vmatmul.mubr.bf16.vlgmr.msra.gmra.mxu0 %v588_v11 }
  0x54   :  { %565 = vmatprep.mubr.msk.bf16.mxu0 %vm728_vm0, %v727_v0  ;;  %550 = vmatpush3.bf16.msra.mxu0 %v597_v18 }
  0x55   :  { %551 = vmatprep.subr.bf16.mxu0 %v727_v0 }
  0x58   :  { %552 = vmatpush3.bf16.msra.mxu0 %v598_v19 }
  0x59   :  { %553 = vmatprep.subr.bf16.mxu0 %v727_v0 }
  0x5c   :  { %554 = vmatpush3.bf16.msra.mxu0 %v599_v30 }
  0x5d   :  { %555 = vmatprep.subr.bf16.mxu0 %v727_v0 }
  0x60   :  { %556 = vmatpush3.bf16.msra.mxu0 %v600_v31 }
  0x61   :  { %557 = vmatprep.subr.bf16.mxu0 %v727_v0 }
  0x64   :  { %558 = vmatpush3.bf16.msra.mxu0 %v601_v32 }
  0x65   :  { %559 = vmatprep.subr.bf16.mxu0 %v727_v0 }
  0x68   :  { %560 = vmatpush3.bf16.msra.mxu0 %v602_v33 }
  0x69   :  { %561 = vmatprep.subr.bf16.mxu0 %v727_v0 }
  0x6c   :  { %562 = vmatpush3.bf16.msra.mxu0 %v603_v34 }
  0x6d   :  { %563 = vmatprep.subr.bf16.mxu0 %v727_v0 }
  0x70   :  { %564 = vmatpush3.bf16.msra.mxu0 %v604_v35 }
 0x113   :  { %v196_v21 = vpop.f32.mrf.mxu0 }
 0x114   :  { %v197_v22 = vadd.f32 %v454_v20, %v196_v21 }
 0x115   :  { %v527_v23 = vpop.f32.mrf.mxu0 }
 0x116   :  { %605 = vtanh.f32 %v197_v22 }
 0x117   :  { %v199_v24 = vpop.f32.mrf.mxu0 }
 0x118   :  { %v200_v25 = vadd.f32 %v454_v20, %v199_v24 }
 0x119   :  { %v528_v26 = vpop.f32.mrf.mxu0 }
 0x11a   :  { %607 = vtanh.f32 %v200_v25 }
 0x123   :  { %v606_v27 = vpop.eup %605 }
 0x127   :  { %v608_v28 = vpop.eup %607 }
 0x128   :  { %v205_v29 = vpack.c.bf16 %v608_v28, %v606_v27 }
 0x12a   :  { %546 = vmatmul.mubr.bf16.vlgmr.msra.gmra.mxu1 %v205_v29 }
 0x1ea   :  { %v311_v37 = vpop.f32.mrf.mxu1 }
 0x1eb   :  { %v312_v38 = vadd.f32 %v464_v36, %v311_v37 }
 0x1ec   :  { %v547_v39 = vpop.f32.mrf.mxu1 }
 0x1ed   :  { %609 = vtanh.f32 %v312_v38 }
 0x1ee   :  { %v314_v40 = vpop.f32.mrf.mxu1 }
 0x1ef   :  { %v315_v41 = vadd.f32 %v464_v36, %v314_v40 }
 0x1f0   :  { %v548_v42 = vpop.f32.mrf.mxu1 }
 0x1f1   :  { %611 = vtanh.f32 %v315_v41 }
 0x1fa   :  { %v610_v43 = vpop.eup %609 }
 0x1fe   :  { %v612_v44 = vpop.eup %611 }
 0x1ff   :  { %v320_v45 = vpack.c.bf16 %v612_v44, %v610_v43 }
 0x201   :  { %566 = vmatmul.mubr.bf16.vlgmr.msra.gmra.mxu0 %v320_v45 }
 0x2c1   :  { %v426_v47 = vpop.f32.mrf.mxu0 }
 0x2c2   :  { %v427_v48 = vadd.f32 %v473_v46, %v426_v47 }
 0x2c3   :  { %v567_v49 = vpop.f32.mrf.mxu0 }
 0x2c4   :  { %433 = vst [vmem:[#allocation10] sm:$0xff] %v427_v48 }
 0x2c5   :  { %v429_v50 = vpop.f32.mrf.mxu0 }
 0x2c6   :  { %v430_v51 = vadd.f32 %v473_v46, %v429_v50 }
 0x2c7   :  { %v568_v52 = vpop.f32.mrf.mxu0 }
 0x2c8   :  { %434 = vst [vmem:[#allocation10 + $0x8] sm:$0xff] %v430_v51 }
 0x2c9   :  { %704 = shalt.err (!%p701_p10)
}
 0x2ca   :  { %s730_s26 = smov 128   ;;  %s731_s6 = smov 8  }
 0x2cb   :  { %446 = dma.vmem_to_hbm [thread:$0]  %s441_s4, 256, %s845_s7, [#allocation4], %s730_s26, %s730_s26, %s731_s6  }
 0x2cc   :  { %719 = dma.done.wait [#allocation4], 256  }
 0x2cd   :  { %720 = vsyncadd [#allocation4], 4294967040 }
 0x2ce   :  { %450 = vsyncpa [#allocation3], 1 }
 0x2cf   :  { %451 = vsyncpa [#allocation6], 1 }
 0x2d0   :  { %452 = vsyncpa [#allocation9], 1 }
 0x2d1   :  { %453 = vsyncpa [#allocation4], 1 }

</bundles_post_ra>
